<compile_context>
chip_gen: v7x
topology: tpu7x:2x2x1
jax: 0.10.0
libtpu: 0.0.40
codegen_flags: <defaults>
</compile_context>

<pallas_src>
import jax
import jax.numpy as jnp
from jax.experimental import pallas as pl
from jax.experimental.pallas import tpu as pltpu


def ensemble_kernel(alpha_ref, w_ref, b_ref, x_ref, o_ref):
    # alpha_ref: (M,) in SMEM (scalar prefetch)
    # w_ref:     (M, C_out, C_in) resident VMEM block (tiny, loaded once)
    # b_ref:     (M, C_out, 1)    resident VMEM block
    # x_ref:     (1, C_in, tile_hw)
    # o_ref:     (1, C_out, tile_hw)
    num_models = w_ref.shape[0]

    # Fold the linear ensemble: W_eff = sum_m alpha_m * W_m (M*C_in*C_out MACs,
    # negligible) instead of scaling/accumulating the full (C_out, HW) output
    # per member.
    w_eff = alpha_ref[0] * w_ref[0]          # (C_out, C_in)
    b_eff = alpha_ref[0] * b_ref[0]          # (C_out, 1)
    for m in range(1, num_models):           # M is static -> unrolled
        w_eff = w_eff + alpha_ref[m] * w_ref[m]
        b_eff = b_eff + alpha_ref[m] * b_ref[m]

    # Single lane-dense matmul: out[c_out, hw] = sum_c W_eff[c_out, c] x[c, hw]
    # (f32 accumulation; cast inputs to bf16 here if tolerance allows on v6e+.)
    y = jnp.dot(w_eff, x_ref[0], preferred_element_type=jnp.float32)
    o_ref[0] = (y + b_eff).astype(o_ref.dtype)


def _pick_spatial_tile(hw, cap=16384):
    """Largest multiple of 128 that divides hw (capped); else full extent."""
    best = 0
    t = 128
    while t <= min(hw, cap):
        if hw % t == 0:
            best = t
        t += 128
    return best if best > 0 else hw


def boosting_ensemble(x_nchw, weights, biases, alphas):
    """x_nchw: (B, C_in, H, W) f32
       weights: (M, C_in, C_out) f32   biases: (M, 1, C_out) f32
       alphas: (M,) f32
       returns (B, C_out, H, W) f32"""
    B, C_in, H, W = x_nchw.shape
    M, _, C_out = weights.shape
    HW = H * W

    # Keep NCHW; just merge H,W into the lane axis (pure reshape, no transpose).
    x3 = x_nchw.reshape(B, C_in, HW)

    # Tiny per-member parameters, re-laid out so the kernel contracts over C_in
    # with HW on the lane axis: W -> (M, C_out, C_in), b -> (M, C_out, 1).
    w_t = jnp.transpose(weights, (0, 2, 1))
    b_t = jnp.transpose(biases.reshape(M, 1, C_out), (0, 2, 1))

    tile_hw = _pick_spatial_tile(HW)
    grid = (B, HW // tile_hw)

    out3 = pl.pallas_call(
        ensemble_kernel,
        out_shape=jax.ShapeDtypeStruct((B, C_out, HW), jnp.float32),
        grid_spec=pltpu.PrefetchScalarGridSpec(
            num_scalar_prefetch=1,            # alphas -> SMEM
            grid=grid,
            in_specs=[
                # all M weights/biases resident across the whole grid
                pl.BlockSpec((M, C_out, C_in), lambda b, t, alpha: (0, 0, 0)),
                pl.BlockSpec((M, C_out, 1), lambda b, t, alpha: (0, 0, 0)),
                # activation tile: batch b, spatial tile t (lane-dense)
                pl.BlockSpec((1, C_in, tile_hw), lambda b, t, alpha: (b, 0, t)),
            ],
            out_specs=pl.BlockSpec((1, C_out, tile_hw),
                                   lambda b, t, alpha: (b, 0, t)),
        ),
        compiler_params=pltpu.CompilerParams(
            # no reduction axis remains; both axes can shard across TCs (v7x)
            dimension_semantics=("parallel", "parallel"),
            # explicit limit with headroom for v7x's 64 MiB physical VMEM
            vmem_limit_bytes=32 * 1024 * 1024),
    )(alphas, w_t, b_t, x3)

    return out3.reshape(B, C_out, H, W)


if __name__ == "__main__":
    B, C_in, H, W = 2, 4, 16, 16
    M, C_out = 3, 4                      # 3 boosted models

    key = jax.random.PRNGKey(0)
    kx, kw, kb = jax.random.split(key, 3)

    x = jax.random.normal(kx, (B, C_in, H, W), dtype=jnp.float32)
    # deterministic synthetic parameters for the 1x1-conv heads
    weights = 0.1 * jax.random.normal(kw, (M, C_in, C_out), dtype=jnp.float32)
    biases = 0.1 * jax.random.normal(kb, (M, 1, C_out), dtype=jnp.float32)
    alphas = jnp.array([0.5, 0.3, 0.2], dtype=jnp.float32)

    out = boosting_ensemble(x, weights, biases, alphas)
    out = jax.block_until_ready(out)

    # pure-JAX reference: sum_i alpha_i * (conv1x1_i(x) + b_i), per member
    ref = sum(
        alphas[i] * (jnp.einsum("bchw,co->bohw", x, weights[i])
                     + biases[i].reshape(1, C_out, 1, 1))
        for i in range(M)
    )

    assert out.shape == (B, C_out, H, W)
    assert jnp.allclose(out, ref, atol=1e-5, rtol=1e-5)
    print("KERNEL_OK")
</pallas_src>

<mosaic_0001>
module attributes {stable_mosaic.version = 11 : i64} {
  func.func @ensemble_kernel(%arg0: i32, %arg1: i32, %arg2: memref<3xf32, #tpu.memory_space<smem>>, %arg3: memref<3x4x4xf32, #tpu.memory_space<vmem>>, %arg4: memref<3x4x1xf32, #tpu.memory_space<vmem>>, %arg5: memref<1x4x256xf32, #tpu.memory_space<vmem>>, %arg6: memref<1x4x256xf32, #tpu.memory_space<vmem>>) attributes {dimension_semantics = [#tpu.dimension_semantics<parallel>, #tpu.dimension_semantics<parallel>], iteration_bounds = array<i64: 2, 1>, scalar_prefetch = 1 : i64, scratch_operands = 0 : i64, tpu.core_type = #tpu.core_type<tc>, window_params = [{pipeline_mode = #tpu.pipeline_mode<synchronous>, transform_indices = @transform_0, window_bounds = array<i64: 3, 4, 4>}, {pipeline_mode = #tpu.pipeline_mode<synchronous>, transform_indices = @transform_1, window_bounds = array<i64: 3, 4, 1>}, {transform_indices = @transform_2, window_bounds = array<i64: 1, 4, 256>}, {transform_indices = @transform_3, window_bounds = array<i64: 1, 4, 256>}]} {
    %c0 = arith.constant 0 : index
    %0 = memref.load %arg2[%c0] : memref<3xf32, #tpu.memory_space<smem>>
    %c0_0 = arith.constant 0 : index
    %c0_1 = arith.constant 0 : index
    %c0_2 = arith.constant 0 : index
    %1 = vector.load %arg3[%c0_0, %c0_1, %c0_2] : memref<3x4x4xf32, #tpu.memory_space<vmem>>, vector<1x4x4xf32>
    %2 = vector.shape_cast %1 : vector<1x4x4xf32> to vector<4x4xf32>
    %3 = vector.broadcast %0 : f32 to vector<4x4xf32>
    %4 = arith.mulf %3, %2 : vector<4x4xf32>
    %c0_3 = arith.constant 0 : index
    %5 = memref.load %arg2[%c0_3] : memref<3xf32, #tpu.memory_space<smem>>
    %c0_4 = arith.constant 0 : index
    %c0_5 = arith.constant 0 : index
    %c0_6 = arith.constant 0 : index
    %6 = vector.load %arg4[%c0_4, %c0_5, %c0_6] : memref<3x4x1xf32, #tpu.memory_space<vmem>>, vector<1x4x1xf32>
    %7 = vector.shape_cast %6 : vector<1x4x1xf32> to vector<4x1xf32>
    %8 = vector.broadcast %5 : f32 to vector<4x1xf32>
    %9 = arith.mulf %8, %7 : vector<4x1xf32>
    %c1 = arith.constant 1 : index
    %10 = memref.load %arg2[%c1] : memref<3xf32, #tpu.memory_space<smem>>
    %c1_7 = arith.constant 1 : index
    %c0_8 = arith.constant 0 : index
    %c0_9 = arith.constant 0 : index
    %11 = vector.load %arg3[%c1_7, %c0_8, %c0_9] : memref<3x4x4xf32, #tpu.memory_space<vmem>>, vector<1x4x4xf32>
    %12 = vector.shape_cast %11 : vector<1x4x4xf32> to vector<4x4xf32>
    %13 = vector.broadcast %10 : f32 to vector<4x4xf32>
    %14 = arith.mulf %13, %12 : vector<4x4xf32>
    %15 = arith.addf %4, %14 : vector<4x4xf32>
    %c1_10 = arith.constant 1 : index
    %16 = memref.load %arg2[%c1_10] : memref<3xf32, #tpu.memory_space<smem>>
    %c1_11 = arith.constant 1 : index
    %c0_12 = arith.constant 0 : index
    %c0_13 = arith.constant 0 : index
    %17 = vector.load %arg4[%c1_11, %c0_12, %c0_13] : memref<3x4x1xf32, #tpu.memory_space<vmem>>, vector<1x4x1xf32>
    %18 = vector.shape_cast %17 : vector<1x4x1xf32> to vector<4x1xf32>
    %19 = vector.broadcast %16 : f32 to vector<4x1xf32>
    %20 = arith.mulf %19, %18 : vector<4x1xf32>
    %21 = arith.addf %9, %20 : vector<4x1xf32>
    %c2 = arith.constant 2 : index
    %22 = memref.load %arg2[%c2] : memref<3xf32, #tpu.memory_space<smem>>
    %c2_14 = arith.constant 2 : index
    %c0_15 = arith.constant 0 : index
    %c0_16 = arith.constant 0 : index
    %23 = vector.load %arg3[%c2_14, %c0_15, %c0_16] : memref<3x4x4xf32, #tpu.memory_space<vmem>>, vector<1x4x4xf32>
    %24 = vector.shape_cast %23 : vector<1x4x4xf32> to vector<4x4xf32>
    %25 = vector.broadcast %22 : f32 to vector<4x4xf32>
    %26 = arith.mulf %25, %24 : vector<4x4xf32>
    %27 = arith.addf %15, %26 : vector<4x4xf32>
    %c2_17 = arith.constant 2 : index
    %28 = memref.load %arg2[%c2_17] : memref<3xf32, #tpu.memory_space<smem>>
    %c2_18 = arith.constant 2 : index
    %c0_19 = arith.constant 0 : index
    %c0_20 = arith.constant 0 : index
    %29 = vector.load %arg4[%c2_18, %c0_19, %c0_20] : memref<3x4x1xf32, #tpu.memory_space<vmem>>, vector<1x4x1xf32>
    %30 = vector.shape_cast %29 : vector<1x4x1xf32> to vector<4x1xf32>
    %31 = vector.broadcast %28 : f32 to vector<4x1xf32>
    %32 = arith.mulf %31, %30 : vector<4x1xf32>
    %33 = arith.addf %21, %32 : vector<4x1xf32>
    %c0_21 = arith.constant 0 : index
    %c0_22 = arith.constant 0 : index
    %c0_23 = arith.constant 0 : index
    %34 = vector.load %arg5[%c0_21, %c0_22, %c0_23] : memref<1x4x256xf32, #tpu.memory_space<vmem>>, vector<1x4x256xf32>
    %35 = vector.shape_cast %34 : vector<1x4x256xf32> to vector<4x256xf32>
    %cst = arith.constant dense<0.000000e+00> : vector<4x256xf32>
    %36 = tpu.matmul %27, %35, %cst {dimension_numbers = #tpu.dot_dimension_numbers<[1], [0], [0], [1], [0, 0, 1, 1], [], []>} : vector<4x4xf32>, vector<4x256xf32>, vector<4x256xf32> -> vector<4x256xf32>
    %37 = vector.broadcast %33 : vector<4x1xf32> to vector<4x256xf32>
    %38 = arith.addf %36, %37 : vector<4x256xf32>
    %c0_24 = arith.constant 0 : index
    %c0_25 = arith.constant 0 : index
    %c0_26 = arith.constant 0 : index
    %39 = vector.load %arg6[%c0_24, %c0_25, %c0_26] : memref<1x4x256xf32, #tpu.memory_space<vmem>>, vector<1x4x256xf32>
    %40 = vector.shape_cast %39 : vector<1x4x256xf32> to vector<4x256xf32>
    %41 = vector.shape_cast %38 : vector<4x256xf32> to vector<1x4x256xf32>
    tpu.vector_store %arg6[%c0_24, %c0_25, %c0_26], %41 {strides = array<i32>} : memref<1x4x256xf32, #tpu.memory_space<vmem>>, vector<1x4x256xf32>,
    return
  }
  func.func @transform_0(%arg0: i32, %arg1: i32, %arg2: memref<3xf32, #tpu.memory_space<smem>>) -> (i32, i32, i32) {
    %c0_i32 = arith.constant 0 : i32
    %c0_i32_0 = arith.constant 0 : i32
    %c0_i32_1 = arith.constant 0 : i32
    %c0_i32_2 = arith.constant 0 : i32
    return %c0_i32, %c0_i32_0, %c0_i32_1 : i32, i32, i32
  }
  func.func @transform_1(%arg0: i32, %arg1: i32, %arg2: memref<3xf32, #tpu.memory_space<smem>>) -> (i32, i32, i32) {
    %c0_i32 = arith.constant 0 : i32
    %c0_i32_0 = arith.constant 0 : i32
    %c0_i32_1 = arith.constant 0 : i32
    %c0_i32_2 = arith.constant 0 : i32
    return %c0_i32, %c0_i32_0, %c0_i32_1 : i32, i32, i32
  }
  func.func @transform_2(%arg0: i32, %arg1: i32, %arg2: memref<3xf32, #tpu.memory_space<smem>>) -> (i32, i32, i32) {
    %c0_i32 = arith.constant 0 : i32
    %c0_i32_0 = arith.constant 0 : i32
    return %arg0, %c0_i32, %arg1 : i32, i32, i32
  }
  func.func @transform_3(%arg0: i32, %arg1: i32, %arg2: memref<3xf32, #tpu.memory_space<smem>>) -> (i32, i32, i32) {
    %c0_i32 = arith.constant 0 : i32
    %c0_i32_0 = arith.constant 0 : i32
    return %arg0, %c0_i32, %arg1 : i32, i32, i32
  }
}

</mosaic_0001>

<bundles_post_ra>
// kernel: tpu_custom_call.1
= control target key start
LH: loop header
LB: loop body
LE: loop exit
PB: predicated region body
PF: predicated region fallthrough
CT: control target
= control target key end

     0   :  { %s865_s0 = inlined_call_operand.vmem [shape: f32[3], index: 0, kind: input, shape index: {}]   ;;  %s866_s1 = inlined_call_operand.hbm [shape: f32[3,4,4], index: 1, kind: input, shape index: {}]   ;;  %s867_s2 = inlined_call_operand.vmem [shape: f32[3,4,1], index: 2, kind: input, shape index: {}]   ;;  %s868_s3 = inlined_call_operand.vmem [shape: f32[2,4,256], index: 3, kind: input, shape index: {}]   ;;  %s869_s4 = inlined_call_operand.hbm [shape: f32[2,4,256], index: 4, kind: output, shape index: {}]  }
   0x1   :  { %s9_s17 = sshll.u32 %s865_s0, 4  ;;  %s10_s17 = int_to_ptr.vmem [resolvable:$true] %s9_s17 }
   0x2   :  { %s543_s18 = scalar_lea.vmem %s10_s17, 16  ;;  %p548_p1 = scmp.lt.s32.totalorder %s10_s17, %s10_s17 }
   0x3   :  { %p544_p0 = scmp.ne.s32.totalorder %s10_s17, %s543_s18  ;;  %p549_p2 = scmp.lt.s32.totalorder %s543_s18, %s543_s18 }
   0x5   :  { %p550_p3 = por %p549_p2, %p548_p1 }
   0x7   :  { %p551_p4 = pnand %p550_p3, %p544_p0 }
   0x9   :  { %554 = shalt.err (!%p551_p4)  }
   0xa   :  { %s669_s19 = smov [#allocation3]  }
   0xb   :  { %12 = dma.vmem_to_smem %s10_s17, 16, %s669_s19, [#allocation2] }
   0xc   :  { %635 = dma.done.wait [#allocation2], 16 }
   0xd   :  { %636 = vsyncadd [#allocation2], 4294967280 }
   0xe   :  { %14 = sfence }
   0xf   :  { %15 = vsyncpa [#allocation5], 0 }
  0x10   :  { %16 = vsyncpa [#allocation6], 0 }
  0x11   :  { %18 = vsyncpa [#allocation6 + $0x1], 0  ;;  %s704_s20 = smov 0   ;;  %s706_s21 = smov 0  }
  0x12   :  { %s708_s0 = smov 0   ;;  %s710_s22 = smov 0  }
  0x13   :  { %s712_s23 = smov 0   ;;  %s714_s24 = smov 0  }
  0x14 LB: > { %s446_s25 = sadd.s32 4294967295, %s667_s24   ;;  %s447_s26 = sadd.s32 4294967294, %s667_s24   ;;  %s667_s24 = sphi %s714_s24, %s24_s24   ;;  %s663_s23 = sphi %s712_s23, %s887_s23   ;;  %s659_s22 = sphi %s710_s22, %s886_s22   ;;  %s655_s0 = sphi %s708_s0, %s885_s0   ;;  %s651_s21 = sphi %s706_s21, %s884_s21   ;;  %s647_s20 = sphi %s704_s20, %s883_s20  }
  0x15   : > { %s36_s27 = sadd.s32 1, %s663_s23  ;;  %s115_s28 = sadd.s32 1, %s655_s0 }
  0x16   : > { %p38_p5 = scmp.ge.s32.totalorder %s36_s27, 2  ;;  %p125_p6 = scmp.ne.s32.totalorder %s655_s0, %s651_s21 }
  0x17   : > { %p126_p7 = scmp.eq.s32.totalorder %s446_s25, 1  ;;  %p131_p8 = scmp.ne.s32.totalorder %s651_s21, %s647_s20 }
  0x18   : > { %s889_s27 = smov (%p38_p5, %s36_s27), 0  ;;  %p132_p10 = scmp.eq.s32.totalorder %s447_s26, 1 }
  0x19   : > { %p744_p9 = por %p126_p7, %p125_p6  ;;  %s110_s30 = ssub.s32 %s663_s23, %s889_s27 }
  0x1a   : > { %p448_p11 = scmp.ge.s32.totalorder %s667_s24, 1  ;;  %p113_p12 = scmp.eq.s32.totalorder %s110_s30, 0 }
  0x1b   : > { %s874_s29 = scalar_select %p744_p9, 1, 0 }
  0x1c   : > { %p751_p13 = por %p132_p10, %p131_p8  ;;  %p139_p0 = scmp.lt.s32.totalorder %s667_s24, 3 }
  0x1d   : > { %s757_s6 = scalar_select %p113_p12, %s655_s0, %s115_s28  }
  0x1e   : > { %s875_s5 = scalar_select %p751_p13, 1, 0 }
  0x1f   : > { %p759_p1 = pnand %p448_p11, %p139_p0  ;;  %p763_p2 = scmp.eq.s32.totalorder %s446_s25, 0 }
  0x20   : > { %s670_s9 = smov [#allocation4]   ;;  %s555_s14 = scalar_lea.hbm %s866_s1, 192 }
  0x21   : > { %s876_s7 = scalar_select %p759_p1, 1, 0 }
  0x22   : > { %s877_s8 = scalar_select %p763_p2, 1, 0 }
  0x23   : > { %p476_p3 = pneg %p759_p1  ;;  %s151_s10 = sshll.u32 %s670_s9, 4  ;;  %s152_s10 = int_to_ptr.vmem [resolvable:$true] %s151_s10 }
  0x24   : > { %p556_p5 = scmp.ne.s32.totalorder %s866_s1, %s555_s14  ;;  %p562_p10 = scmp.lt.u32.totalorder %s555_s14, %s866_s1 }
  0x25   : > { %p771_p4 = pnand %p763_p2, %p476_p3 }
  0x27   : > { %p557_p6 = pneg %p771_p4 }
  0x29   : > { %p558_p7 = pnand %p557_p6, %p556_p5 }
  0x2b   : > { %p559_p8 = pneg %p558_p7 }
  0x2d   : > { %p564_p11 = pnand %p562_p10, %p559_p8 }
  0x2f   : > { %567 = shalt.err (!%p564_p11)
}
  0x30   : > { %s568_s19 = scalar_lea.vmem %s152_s10, 192  ;;  %p576_p13 = scmp.lt.s32.totalorder %s152_s10, %s152_s10 }
  0x31   : > { %p569_p12 = scmp.ne.s32.totalorder %s152_s10, %s568_s19  ;;  %p577_p9 = scmp.lt.s32.totalorder %s568_s19, %s568_s19 }
  0x33   : > { %p571_p0 = pnand %p569_p12, %p557_p6  ;;  %p578_p2 = por %p577_p9, %p576_p13 }
  0x35   : > { %p572_p3 = pneg %p571_p0 }
  0x37   : > { %p579_p1 = pnand %p578_p2, %p572_p3 }
  0x39   : > { %582 = shalt.err (!%p579_p1)
}
  0x3a   : > { %s671_s25 = smov 64   ;;  %s672_s26 = smov 4  }
  0x3b   : > { %479 = dma.hbm_to_vmem [thread:$0]  (!%p771_p4), %s866_s1, 192, %s152_s10, [#allocation5], %s671_s25, %s671_s25, %s672_s26  }
  0x3c   : > { %p879_p5 = scmp.ne.s32.totalorder %s876_s7, 0 }
  0x3d   : > { %p880_p7 = scmp.ne.s32.totalorder (!%p879_p5), %s877_s8, 0 }
  0x3e   : > { %183 = sbr.rel (%p879_p5) target bundleno = 315 (0x13b), region = 32 }
  0x45   : > { %638 = dma.done.wait (%p880_p7), [#allocation5], 192  }
  0x46   : > { %640 = vsyncadd (%p880_p7), [#allocation5], 4294967104  ;;  %p212_p9 = scmp.lt.s32.totalorder %s659_s22, 1  ;;  %v673_v0 = vmov 0.0   ;;  %s222_s9 = sld [smem:[#allocation3]]  ;;  %v674_v1 = vmov 0  }
  0x47   : > { %329 = vmatprep.mubr.f32.mxu0 %v673_v0  ;;  %s456_s11 = sld [smem:[#allocation3 + $0x1]]  ;;  %541 = vset.pattern.permute.xlu0 %v674_v1  ;;  %s458_s10 = sld [smem:[#allocation3 + $0x2]]  ;;  %vm260_vm0 = vcmask 1043456   ;;  %v223_v3 = vld [vmem:[#allocation4] sm:$0xf]  ;;  %vm256_vm1 = vcmask 31744  }
  0x48   : > { %s213_s12 = scalar_select %p212_p9, %s659_s22, 1  ;;  %v230_v5 = vld [vmem:[#allocation4 + $0x4] sm:$0xf]  ;;  %v240_v10 = vld [vmem:[#allocation4 + $0x8] sm:$0xf] }
  0x49   : > { %v226_v11 = vld [vmem:[%s867_s2] sm:$0xf]  ;;  %v457_v12 = vld [vmem:[%s867_s2 + $0x4] sm:$0xf]  ;;  %v459_v16 = vld [vmem:[%s867_s2 + $0x8] sm:$0xf] }
  0x4a   : > { %s468_s13 = sshll.u32 %s213_s12, 3  ;;  %s208_s26 = sand.u32 1, %s651_s21  }
  0x4b   : > { %s219_s15 = scalar_lea.vmem %s868_s3, %s468_s13  ;;  %s453_s28 = sshll.u32 %s208_s26, 3 }
  0x4c   : > { %v248_v2 = vld [vmem:[%s219_s15] sm:$0xff]  ;;  %v224_v4 = vstv %s222_s9  ;;  %s469_s30 = sshll.u32 %s659_s22, 7  ;;  %s210_s9 = scalar_lea.vmem [#allocation7], %s453_s28 }
  0x4d   : > { %v231_v6 = vstv %s456_s11  ;;  %v255_v7 = vcombine.high %v248_v2, %v248_v2  ;;  %v225_v8 = vmul.f32 %v224_v4, %v223_v3  ;;  %v241_v13 = vstv %s458_s10  ;;  %s358_s11 = sshll.u32 %s210_s9, 4  ;;  %s818_s13 = scalar_lea.hbm %s869_s4, %s469_s30  ;;  %s820_s11 = int_to_ptr.vmem [resolvable:$true] %s358_s11 }
  0x4e   : > { %v232_v9 = vmul.f32 %v231_v6, %v230_v5  ;;  %v227_v14 = vmul.f32 %v226_v11, %v224_v4  ;;  %v236_v15 = vmul.f32 %v457_v12, %v231_v6  ;;  %v242_v18 = vmul.f32 %v241_v13, %v240_v10  ;;  %s342_s7 = scalar_lea.sflag [#allocation6], %s208_s26  ;;  %s583_s14 = scalar_lea.vmem %s820_s11, 128 }
  0x4f   : > { %460 = vmatprep.subr.msk.mxu0 %vm260_vm0, %v255_v7  ;;  %v246_v19 = vmul.f32 %v459_v16, %v241_v13  ;;  %p584_p13 = scmp.ne.s32.totalorder %s820_s11, %s583_s14  ;;  %p881_p1 = scmp.ne.s32.totalorder %s874_s29, 0 }
  0x50   : > { %v233_v17 = vadd.f32 %v232_v9, %v225_v8  ;;  %461 = vmatpush1.msk.msra.mxu0 %vm260_vm0, %v248_v2  ;;  %v237_v20 = vadd.f32 %v236_v15, %v227_v14  ;;  %s675_s22 = smov [#allocation7]  }
  0x51   : > { %p585_p2 = pnand %p584_p13, %p881_p1  ;;  %s587_s15 = sshll.u32 %s675_s22, 4  ;;  %s588_s15 = int_to_ptr.vmem [resolvable:$false] %s587_s15 }
  0x52   : > { %v243_v21 = vadd.f32 %v242_v18, %v233_v17  ;;  %v247_v22 = vadd.f32 %v246_v19, %v237_v20  ;;  %s589_s8 = scalar_lea.vmem %s588_s15, 256  ;;  %p590_p6 = scmp.lt.s32.totalorder %s820_s11, %s588_s15 }
  0x53   : > { %p586_p4 = pneg %p585_p2  ;;  %p591_p8 = scmp.lt.s32.totalorder %s589_s8, %s583_s14 }
  0x54   : > { %462 = vmatmul.mubr.msk.f32.vlgmr.msra.gmra.mrb[0].mxu0 %vm256_vm1, %v243_v21  ;;  %251 = vperm.xlu0 %541, %v247_v22  }
  0x55   : > { %p592_p10 = por %p591_p8, %p590_p6 }
  0x57   : > { %p593_p11 = pnand %p592_p10, %p586_p4 }
  0xd3   : > { %v252_v23 = vpop.permute.xlu0 %251 }
 0x127   : > { %v331_v24 = vpop.f32.mrb[0].mxu0 }
 0x128   : > { %v332_v25 = vadd.f32 %v331_v24, %v252_v23  ;;  %v333_v26 = vpop.f32.mrb[1].mxu0 }
 0x129   : > { %v334_v27 = vadd.f32 %v333_v26, %v252_v23 }
 0x12b   : > { %v338_v28 = vcombine.low %v332_v25, %v334_v27 }
 0x12d   : > { %340 = vst [vmem:[%s210_s9] sm:$0xff] %v338_v28 }
 0x12e   : > { %596 = shalt.err (!%p593_p11)
}
 0x12f   : > { %s597_s16 = scalar_lea.hbm %s818_s13, 128  ;;  %s601_s19 = scalar_lea.hbm %s869_s4, 256 }
 0x130   : > { %p598_p12 = scmp.ne.s32.totalorder %s818_s13, %s597_s16  ;;  %p602_p5 = scmp.lt.u32.totalorder %s818_s13, %s869_s4 }
 0x131   : > { %p603_p7 = scmp.lt.u32.totalorder %s601_s19, %s597_s16  ;;  %p605_p13 = scmp.lt.u32.totalorder %s597_s16, %s818_s13 }
 0x132   : > { %p599_p0 = pnand %p598_p12, %p881_p1 }
 0x133   : > { %p604_p9 = por %p603_p7, %p602_p5 }
 0x134   : > { %p600_p3 = pneg %p599_p0 }
 0x135   : > { %p606_p2 = por %p605_p13, %p604_p9 }
 0x137   : > { %p607_p4 = pnand %p606_p2, %p600_p3 }
 0x139   : > { %610 = shalt.err (!%p607_p4)
}
 0x13a   : > { %474 = dma.vmem_to_hbm [thread:$0]  (%p881_p1), %s820_s11, 128, %s818_s13, %s342_s7  }
 0x13b PF: > { %p486_p6 = scmp.ge.s32.totalorder %s667_s24, 2  ;;  %s370_s28 = sand.u32 1, %s647_s20  }
 0x13c   : > { %p882_p8 = scmp.ne.s32.totalorder %s875_s5, 0  ;;  %s371_s30 = scalar_lea.sflag [#allocation6], %s370_s28 }
 0x13e   : > { %p481_p10 = pnand %p486_p6, %p882_p8 }
 0x140   : > { %642 = dma.done.wait (!%p481_p10), %s371_s30, 128  }
 0x141   : > { %644 = vsyncadd (!%p481_p10), %s371_s30, 4294967168  ;;  %s24_s24 = sadd.s32 1, %s667_s24   ;;  %s883_s20 = smov %s651_s21 }
 0x142   : > { %p21_p11 = scmp.ge.s32.totalorder %s24_s24, 4   ;;  %s884_s21 = smov %s655_s0 }
 0x143   : > { %s885_s0 = smov %s757_s6  ;;  %s886_s22 = smov %s663_s23 }
 0x144   : > { %s887_s23 = smov %s889_s27  ;;  %23 = sbr.rel (!%p21_p11) target bundleno = 20 (0x14), region = 76 }
 0x14b   :  { %376 = vsyncpa [#allocation5], 1 }
 0x14c   :  { %378 = vsyncpa [#allocation5 + $0x1], 1 }
 0x14d   :  { %379 = vsyncpa [#allocation6], 1 }
 0x14e   :  { %381 = vsyncpa [#allocation6 + $0x1], 1 }

</bundles_post_ra>
